<compile_context>
chip_gen: v7x
topology: tpu7x:2x2x1
jax: 0.10.0
libtpu: 0.0.40
codegen_flags: <defaults>
</compile_context>

<pallas_src>
import numpy as np
import jax
import jax.numpy as jnp
from jax import lax
from jax.experimental import pallas as pl
from jax.experimental.pallas import tpu as pltpu

EPS = 1e-5


def _tensorcores_per_chip():
    """Best-effort TensorCores-per-chip query (v7x = 2, v5e/v6e = 1)."""
    try:
        info = pltpu.get_tpu_info()
        for name in ("num_tensorcores", "tensorcores_per_chip", "num_cores",
                     "cores_per_chip", "core_count"):
            v = getattr(info, name, None)
            if isinstance(v, int) and v > 0:
                return v
    except Exception:
        pass
    try:
        kind = jax.devices()[0].device_kind.lower()
        if "v7" in kind or "7x" in kind:
            return 2
    except Exception:
        pass
    return 1


def _make_kernel(W, L, use_res):
    OFFSETS = [(ky, kx) for ky in (-1, 0, 1) for kx in (-1, 0, 1)]

    def kernel(x_ref, w1_ref, bh_ref, wm_ref, w2_ref, b3_ref, o_ref):
        x = x_ref[0].astype(jnp.float32)                                  # (cin, L)

        # ---- 1x1 expand conv (BN1 scale pre-folded into w1) + bias ----
        h = jnp.dot(w1_ref[...], x, preferred_element_type=jnp.float32)  # (hid, L)
        h = h + bh_ref[0]

        # ---- depthwise 3x3, stride 1, zero pad 1 ----
        # out[c, p] = sum_k wm[k, c, p] * h[c, p + s_k]; wm already contains
        # tap weight * BN2 scale * 0/1 boundary mask (also zeroes cross-image
        # reads when the batch is folded into the lane axis).
        acc = wm_ref[4] * h                                               # center tap
        for k, (ky, kx) in enumerate(OFFSETS):
            if ky == 0 and kx == 0:
                continue
            s = ky * W + kx
            # want shifted[p] = h[p + s] -> roll by (-s) mod L (np.roll semantics)
            shifted = pltpu.roll(h, shift=(-s) % L, axis=1)
            acc = acc + wm_ref[k] * shifted
        h = jnp.clip(acc + bh_ref[1], 0.0, 6.0)                           # BN2 + ReLU6

        # ---- 1x1 projection conv (BN3 scale pre-folded into w2) ----
        y = jnp.dot(w2_ref[...], h, preferred_element_type=jnp.float32)  # (cout, L)
        y = jnp.clip(y + b3_ref[...], 0.0, 6.0)                           # BN3 + ReLU6

        if use_res:                                                       # residual
            y = y + x
        o_ref[0] = y.astype(o_ref.dtype)

    return kernel


def _prepare_operands(params, H, W, G):
    """Host-side constant folding: BN scales into conv weights, tap weight *
    BN2 scale * boundary mask into a single resident tensor, packed biases."""
    HW = H * W
    hid = params["w1"].shape[0]

    w1f = params["w1"] * params["s1"][:, None]                  # (hid, cin)
    w2f = params["w2"] * params["s3"][:, None]                  # (cout, hid)
    bh = jnp.stack([params["b1"], params["b2"]])[:, :, None]    # (2, hid, 1)
    b3 = params["b3"][:, None]                                  # (cout, 1)

    # Depthwise taps (row-major over (ky, kx)), BN2 scale folded in: (9, hid).
    w3 = jnp.transpose(params["w_dw"].reshape(hid, 9), (1, 0)) * params["s2"][None, :]

    # Per-tap 0/1 validity masks over the flattened lane axis, tiled per image.
    yy, xx = np.meshgrid(np.arange(H), np.arange(W), indexing="ij")
    mask = np.empty((9, HW), np.float32)
    k = 0
    for ky in (-1, 0, 1):
        for kx in (-1, 0, 1):
            valid = (yy + ky >= 0) & (yy + ky < H) & (xx + kx >= 0) & (xx + kx < W)
            mask[k] = valid.reshape(-1).astype(np.float32)
            k += 1
    mask = np.tile(mask, (1, G))                                # (9, G*HW)

    wm = w3[:, :, None] * jnp.asarray(mask)[:, None, :]         # (9, hid, G*HW)
    return w1f, bh, wm, w2f, b3


def inverted_residual_metaacon(x_nchw, params, use_res, *, fold_batch=None):
    N, cin, H, W = x_nchw.shape
    cout = params["w2"].shape[0]
    HW = H * W

    if fold_batch is None:
        # Single-TC chips (v5e/v6e): fold batch into lanes (1 grid step).
        # Multi-TC chips (v7x): keep grid=(N,) "parallel" so TCs split the batch.
        fold_batch = _tensorcores_per_chip() < 2
    G = N if fold_batch else 1          # images folded into lanes per grid step
    steps = N // G
    L = G * HW

    w1f, bh, wm, w2f, b3 = _prepare_operands(params, H, W, G)

    # (N,cin,H,W) -> (steps, cin, G*HW): channels on sublanes, the step's images
    # concatenated along lanes.  G==1 is a pure reshape; G==N is a tiny one-off
    # XLA transpose outside the kernel (16 KiB at these shapes).
    x = x_nchw.reshape(steps, G, cin, HW).transpose(0, 2, 1, 3).reshape(steps, cin, L)

    def resident(a):  # fully-resident (constant index map) weight/bias block
        nd = a.ndim
        return pl.BlockSpec(a.shape, lambda n, _nd=nd: (0,) * _nd)

    kernel = _make_kernel(W, L, use_res)
    out = pl.pallas_call(
        kernel,
        out_shape=jax.ShapeDtypeStruct((steps, cout, L), x.dtype),
        grid=(steps,),
        in_specs=[
            pl.BlockSpec((1, cin, L), lambda n: (n, 0, 0)),
            resident(w1f), resident(bh), resident(wm), resident(w2f), resident(b3),
        ],
        out_specs=pl.BlockSpec((1, cout, L), lambda n: (n, 0, 0)),
        compiler_params=pltpu.CompilerParams(
            dimension_semantics=("parallel",)),   # grid steps are independent
    )(x, w1f, bh, wm, w2f, b3)

    return out.reshape(steps, cout, G, HW).transpose(0, 2, 1, 3).reshape(N, cout, H, W)


def init_params(key, inp, oup, expand_ratio):
    """Deterministic synthetic params mirroring the PyTorch module shapes
    (stride==1, expand_ratio != 1 branch), BN folded to inference scale/bias."""
    hid = int(inp * expand_ratio)
    ks = jax.random.split(key, 6)

    def bn(k, c):
        kg, kb, km, kv = jax.random.split(k, 4)
        gamma = jax.random.uniform(kg, (c,), minval=0.5, maxval=1.5)
        beta = jax.random.normal(kb, (c,)) * 0.1
        mean = jax.random.normal(km, (c,)) * 0.1
        var = jax.random.uniform(kv, (c,), minval=0.5, maxval=1.5)
        scale = (gamma / jnp.sqrt(var + EPS)).astype(jnp.float32)
        bias = (beta - mean * scale).astype(jnp.float32)
        return scale, bias

    # Conv2d(inp, hid, 1, bias=False): torch (hid, inp, 1, 1) -> (hid, inp)
    w1 = (jax.random.normal(ks[0], (hid, inp)) * 0.1).astype(jnp.float32)
    s1, b1 = bn(ks[1], hid)
    # Conv2d(hid, hid, 3, 1, 1, groups=hid, bias=False): (hid, 1, 3, 3)
    w_dw = (jax.random.normal(ks[2], (hid, 1, 3, 3)) * 0.1).astype(jnp.float32)
    s2, b2 = bn(ks[3], hid)
    # Conv2d(hid, oup, 1, bias=False): torch (oup, hid, 1, 1) -> (oup, hid)
    w2 = (jax.random.normal(ks[4], (oup, hid)) * 0.1).astype(jnp.float32)
    s3, b3 = bn(ks[5], oup)
    return dict(w1=w1, s1=s1, b1=b1, w_dw=w_dw, s2=s2, b2=b2, w2=w2, s3=s3, b3=b3)


def reference(x_nchw, params, use_res):
    """Pure-JAX reference mirroring the PyTorch forward (inference BN)."""
    hp = jax.lax.Precision.HIGHEST
    x = x_nchw.astype(jnp.float32)
    hid = params["w_dw"].shape[0]
    h = jnp.einsum("oc,nchw->nohw", params["w1"], x, precision=hp)
    h = h * params["s1"][None, :, None, None] + params["b1"][None, :, None, None]
    h = lax.conv_general_dilated(
        h, params["w_dw"], window_strides=(1, 1), padding=((1, 1), (1, 1)),
        dimension_numbers=("NCHW", "OIHW", "NCHW"),
        feature_group_count=hid, precision=hp)
    h = jnp.clip(h * params["s2"][None, :, None, None]
                 + params["b2"][None, :, None, None], 0.0, 6.0)
    y = jnp.einsum("oc,nchw->nohw", params["w2"], h, precision=hp)
    y = jnp.clip(y * params["s3"][None, :, None, None]
                 + params["b3"][None, :, None, None], 0.0, 6.0)
    return x + y if use_res else y


if __name__ == "__main__":
    key = jax.random.PRNGKey(0)
    kx_, kp1, kp2 = jax.random.split(key, 3)

    # Config 1: InvertedResidual_MetaAcon(inp=8, oup=8, stride=1, expand_ratio=2)
    # -> residual branch active.
    N, inp, oup, H, W = 2, 8, 8, 16, 16
    stride, expand_ratio = 1, 2
    use_res = (stride == 1) and (inp == oup)
    x = jax.random.normal(kx_, (N, inp, H, W), dtype=jnp.float32)
    params = init_params(kp1, inp, oup, expand_ratio)
    ref = jax.block_until_ready(reference(x, params, use_res))

    # Exercise both execution strategies (batch folded into lanes, and batch on
    # the grid) plus the auto-detected default, regardless of the chip we're on.
    for fold in (True, False, None):
        out = jax.block_until_ready(
            inverted_residual_metaacon(x, params, use_res, fold_batch=fold))
        np.testing.assert_allclose(np.array(out), np.array(ref), rtol=2e-4, atol=2e-4)
        assert out.shape == (N, oup, H, W)

    # Config 2: inp != oup -> no residual connection.
    oup2 = 16
    params2 = init_params(kp2, inp, oup2, expand_ratio)
    out2 = jax.block_until_ready(inverted_residual_metaacon(x, params2, False))
    ref2 = jax.block_until_ready(reference(x, params2, False))
    np.testing.assert_allclose(np.array(out2), np.array(ref2), rtol=2e-4, atol=2e-4)
    assert out2.shape == (N, oup2, H, W)

    print("KERNEL_OK")
</pallas_src>

<mosaic_0001>
module attributes {stable_mosaic.version = 11 : i64} {
  func.func @kernel(%arg0: i32, %arg1: memref<1x8x512xf32, #tpu.memory_space<vmem>>, %arg2: memref<16x8xf32, #tpu.memory_space<vmem>>, %arg3: memref<2x16x1xf32, #tpu.memory_space<vmem>>, %arg4: memref<9x16x512xf32, #tpu.memory_space<vmem>>, %arg5: memref<8x16xf32, #tpu.memory_space<vmem>>, %arg6: memref<8x1xf32, #tpu.memory_space<vmem>>, %arg7: memref<1x8x512xf32, #tpu.memory_space<vmem>>) attributes {dimension_semantics = [#tpu.dimension_semantics<parallel>], iteration_bounds = array<i64: 1>, scalar_prefetch = 0 : i64, scratch_operands = 0 : i64, tpu.core_type = #tpu.core_type<tc>, window_params = [{transform_indices = @transform_0, window_bounds = array<i64: 1, 8, 512>}, {pipeline_mode = #tpu.pipeline_mode<synchronous>, transform_indices = @transform_1, window_bounds = array<i64: 16, 8>}, {pipeline_mode = #tpu.pipeline_mode<synchronous>, transform_indices = @transform_2, window_bounds = array<i64: 2, 16, 1>}, {pipeline_mode = #tpu.pipeline_mode<synchronous>, transform_indices = @transform_3, window_bounds = array<i64: 9, 16, 512>}, {pipeline_mode = #tpu.pipeline_mode<synchronous>, transform_indices = @transform_4, window_bounds = array<i64: 8, 16>}, {pipeline_mode = #tpu.pipeline_mode<synchronous>, transform_indices = @transform_5, window_bounds = array<i64: 8, 1>}, {transform_indices = @transform_6, window_bounds = array<i64: 1, 8, 512>}]} {
    %c0 = arith.constant 0 : index
    %c0_0 = arith.constant 0 : index
    %c0_1 = arith.constant 0 : index
    %0 = vector.load %arg1[%c0, %c0_0, %c0_1] : memref<1x8x512xf32, #tpu.memory_space<vmem>>, vector<1x8x512xf32>
    %1 = vector.shape_cast %0 : vector<1x8x512xf32> to vector<8x512xf32>
    %c0_2 = arith.constant 0 : index
    %c0_3 = arith.constant 0 : index
    %2 = vector.load %arg2[%c0_2, %c0_3] : memref<16x8xf32, #tpu.memory_space<vmem>>, vector<16x8xf32>
    %cst = arith.constant dense<0.000000e+00> : vector<16x512xf32>
    %3 = tpu.matmul %2, %1, %cst {dimension_numbers = #tpu.dot_dimension_numbers<[1], [0], [0], [1], [0, 0, 1, 1], [], []>} : vector<16x8xf32>, vector<8x512xf32>, vector<16x512xf32> -> vector<16x512xf32>
    %c0_4 = arith.constant 0 : index
    %c0_5 = arith.constant 0 : index
    %c0_6 = arith.constant 0 : index
    %4 = vector.load %arg3[%c0_4, %c0_5, %c0_6] : memref<2x16x1xf32, #tpu.memory_space<vmem>>, vector<1x16x1xf32>
    %5 = vector.shape_cast %4 : vector<1x16x1xf32> to vector<16x1xf32>
    %6 = vector.broadcast %5 : vector<16x1xf32> to vector<16x512xf32>
    %7 = arith.addf %3, %6 : vector<16x512xf32>
    %c4 = arith.constant 4 : index
    %c0_7 = arith.constant 0 : index
    %c0_8 = arith.constant 0 : index
    %8 = vector.load %arg4[%c4, %c0_7, %c0_8] : memref<9x16x512xf32, #tpu.memory_space<vmem>>, vector<1x16x512xf32>
    %9 = vector.shape_cast %8 : vector<1x16x512xf32> to vector<16x512xf32>
    %10 = arith.mulf %9, %7 : vector<16x512xf32>
    %c17_i32 = arith.constant 17 : i32
    %11 = tpu.dynamic_rotate %7 by %c17_i32 dim 1 : vector<16x512xf32>, i32 -> vector<16x512xf32>
    %c0_9 = arith.constant 0 : index
    %c0_10 = arith.constant 0 : index
    %c0_11 = arith.constant 0 : index
    %12 = vector.load %arg4[%c0_9, %c0_10, %c0_11] : memref<9x16x512xf32, #tpu.memory_space<vmem>>, vector<1x16x512xf32>
    %13 = vector.shape_cast %12 : vector<1x16x512xf32> to vector<16x512xf32>
    %14 = arith.mulf %13, %11 : vector<16x512xf32>
    %15 = arith.addf %10, %14 : vector<16x512xf32>
    %c16_i32 = arith.constant 16 : i32
    %16 = tpu.dynamic_rotate %7 by %c16_i32 dim 1 : vector<16x512xf32>, i32 -> vector<16x512xf32>
    %c1 = arith.constant 1 : index
    %c0_12 = arith.constant 0 : index
    %c0_13 = arith.constant 0 : index
    %17 = vector.load %arg4[%c1, %c0_12, %c0_13] : memref<9x16x512xf32, #tpu.memory_space<vmem>>, vector<1x16x512xf32>
    %18 = vector.shape_cast %17 : vector<1x16x512xf32> to vector<16x512xf32>
    %19 = arith.mulf %18, %16 : vector<16x512xf32>
    %20 = arith.addf %15, %19 : vector<16x512xf32>
    %c15_i32 = arith.constant 15 : i32
    %21 = tpu.dynamic_rotate %7 by %c15_i32 dim 1 : vector<16x512xf32>, i32 -> vector<16x512xf32>
    %c2 = arith.constant 2 : index
    %c0_14 = arith.constant 0 : index
    %c0_15 = arith.constant 0 : index
    %22 = vector.load %arg4[%c2, %c0_14, %c0_15] : memref<9x16x512xf32, #tpu.memory_space<vmem>>, vector<1x16x512xf32>
    %23 = vector.shape_cast %22 : vector<1x16x512xf32> to vector<16x512xf32>
    %24 = arith.mulf %23, %21 : vector<16x512xf32>
    %25 = arith.addf %20, %24 : vector<16x512xf32>
    %c1_i32 = arith.constant 1 : i32
    %26 = tpu.dynamic_rotate %7 by %c1_i32 dim 1 : vector<16x512xf32>, i32 -> vector<16x512xf32>
    %c3 = arith.constant 3 : index
    %c0_16 = arith.constant 0 : index
    %c0_17 = arith.constant 0 : index
    %27 = vector.load %arg4[%c3, %c0_16, %c0_17] : memref<9x16x512xf32, #tpu.memory_space<vmem>>, vector<1x16x512xf32>
    %28 = vector.shape_cast %27 : vector<1x16x512xf32> to vector<16x512xf32>
    %29 = arith.mulf %28, %26 : vector<16x512xf32>
    %30 = arith.addf %25, %29 : vector<16x512xf32>
    %c511_i32 = arith.constant 511 : i32
    %31 = tpu.dynamic_rotate %7 by %c511_i32 dim 1 : vector<16x512xf32>, i32 -> vector<16x512xf32>
    %c5 = arith.constant 5 : index
    %c0_18 = arith.constant 0 : index
    %c0_19 = arith.constant 0 : index
    %32 = vector.load %arg4[%c5, %c0_18, %c0_19] : memref<9x16x512xf32, #tpu.memory_space<vmem>>, vector<1x16x512xf32>
    %33 = vector.shape_cast %32 : vector<1x16x512xf32> to vector<16x512xf32>
    %34 = arith.mulf %33, %31 : vector<16x512xf32>
    %35 = arith.addf %30, %34 : vector<16x512xf32>
    %c497_i32 = arith.constant 497 : i32
    %36 = tpu.dynamic_rotate %7 by %c497_i32 dim 1 : vector<16x512xf32>, i32 -> vector<16x512xf32>
    %c6 = arith.constant 6 : index
    %c0_20 = arith.constant 0 : index
    %c0_21 = arith.constant 0 : index
    %37 = vector.load %arg4[%c6, %c0_20, %c0_21] : memref<9x16x512xf32, #tpu.memory_space<vmem>>, vector<1x16x512xf32>
    %38 = vector.shape_cast %37 : vector<1x16x512xf32> to vector<16x512xf32>
    %39 = arith.mulf %38, %36 : vector<16x512xf32>
    %40 = arith.addf %35, %39 : vector<16x512xf32>
    %c496_i32 = arith.constant 496 : i32
    %41 = tpu.dynamic_rotate %7 by %c496_i32 dim 1 : vector<16x512xf32>, i32 -> vector<16x512xf32>
    %c7 = arith.constant 7 : index
    %c0_22 = arith.constant 0 : index
    %c0_23 = arith.constant 0 : index
    %42 = vector.load %arg4[%c7, %c0_22, %c0_23] : memref<9x16x512xf32, #tpu.memory_space<vmem>>, vector<1x16x512xf32>
    %43 = vector.shape_cast %42 : vector<1x16x512xf32> to vector<16x512xf32>
    %44 = arith.mulf %43, %41 : vector<16x512xf32>
    %45 = arith.addf %40, %44 : vector<16x512xf32>
    %c495_i32 = arith.constant 495 : i32
    %46 = tpu.dynamic_rotate %7 by %c495_i32 dim 1 : vector<16x512xf32>, i32 -> vector<16x512xf32>
    %c8 = arith.constant 8 : index
    %c0_24 = arith.constant 0 : index
    %c0_25 = arith.constant 0 : index
    %47 = vector.load %arg4[%c8, %c0_24, %c0_25] : memref<9x16x512xf32, #tpu.memory_space<vmem>>, vector<1x16x512xf32>
    %48 = vector.shape_cast %47 : vector<1x16x512xf32> to vector<16x512xf32>
    %49 = arith.mulf %48, %46 : vector<16x512xf32>
    %50 = arith.addf %45, %49 : vector<16x512xf32>
    %c1_26 = arith.constant 1 : index
    %c0_27 = arith.constant 0 : index
    %c0_28 = arith.constant 0 : index
    %51 = vector.load %arg3[%c1_26, %c0_27, %c0_28] : memref<2x16x1xf32, #tpu.memory_space<vmem>>, vector<1x16x1xf32>
    %52 = vector.shape_cast %51 : vector<1x16x1xf32> to vector<16x1xf32>
    %53 = vector.broadcast %52 : vector<16x1xf32> to vector<16x512xf32>
    %54 = arith.addf %50, %53 : vector<16x512xf32>
    %cst_29 = arith.constant 0.000000e+00 : f32
    %cst_30 = arith.constant 6.000000e+00 : f32
    %55 = vector.broadcast %cst_29 : f32 to vector<16x512xf32>
    %56 = arith.maximumf %55, %54 : vector<16x512xf32>
    %57 = vector.broadcast %cst_30 : f32 to vector<16x512xf32>
    %58 = arith.minimumf %57, %56 : vector<16x512xf32>
    %c0_31 = arith.constant 0 : index
    %c0_32 = arith.constant 0 : index
    %59 = vector.load %arg5[%c0_31, %c0_32] : memref<8x16xf32, #tpu.memory_space<vmem>>, vector<8x16xf32>
    %cst_33 = arith.constant dense<0.000000e+00> : vector<8x512xf32>
    %60 = tpu.matmul %59, %58, %cst_33 {dimension_numbers = #tpu.dot_dimension_numbers<[1], [0], [0], [1], [0, 0, 1, 1], [], []>} : vector<8x16xf32>, vector<16x512xf32>, vector<8x512xf32> -> vector<8x512xf32>
    %c0_34 = arith.constant 0 : index
    %c0_35 = arith.constant 0 : index
    %61 = vector.load %arg6[%c0_34, %c0_35] : memref<8x1xf32, #tpu.memory_space<vmem>>, vector<8x1xf32>
    %62 = vector.broadcast %61 : vector<8x1xf32> to vector<8x512xf32>
    %63 = arith.addf %60, %62 : vector<8x512xf32>
    %cst_36 = arith.constant 0.000000e+00 : f32
    %cst_37 = arith.constant 6.000000e+00 : f32
    %64 = vector.broadcast %cst_36 : f32 to vector<8x512xf32>
    %65 = arith.maximumf %64, %63 : vector<8x512xf32>
    %66 = vector.broadcast %cst_37 : f32 to vector<8x512xf32>
    %67 = arith.minimumf %66, %65 : vector<8x512xf32>
    %68 = arith.addf %67, %1 : vector<8x512xf32>
    %c0_38 = arith.constant 0 : index
    %c0_39 = arith.constant 0 : index
    %c0_40 = arith.constant 0 : index
    %69 = vector.load %arg7[%c0_38, %c0_39, %c0_40] : memref<1x8x512xf32, #tpu.memory_space<vmem>>, vector<1x8x512xf32>
    %70 = vector.shape_cast %69 : vector<1x8x512xf32> to vector<8x512xf32>
    %71 = vector.shape_cast %68 : vector<8x512xf32> to vector<1x8x512xf32>
    tpu.vector_store %arg7[%c0_38, %c0_39, %c0_40], %71 {strides = array<i32>} : memref<1x8x512xf32, #tpu.memory_space<vmem>>, vector<1x8x512xf32>,
    return
  }
  func.func @transform_0(%arg0: i32) -> (i32, i32, i32) {
    %c0_i32 = arith.constant 0 : i32
    %c0_i32_0 = arith.constant 0 : i32
    %c0_i32_1 = arith.constant 0 : i32
    return %arg0, %c0_i32, %c0_i32_0 : i32, i32, i32
  }
  func.func @transform_1(%arg0: i32) -> (i32, i32) {
    %c0_i32 = arith.constant 0 : i32
    %c0_i32_0 = arith.constant 0 : i32
    %c0_i32_1 = arith.constant 0 : i32
    return %c0_i32, %c0_i32_0 : i32, i32
  }
  func.func @transform_2(%arg0: i32) -> (i32, i32, i32) {
    %c0_i32 = arith.constant 0 : i32
    %c0_i32_0 = arith.constant 0 : i32
    %c0_i32_1 = arith.constant 0 : i32
    %c0_i32_2 = arith.constant 0 : i32
    return %c0_i32, %c0_i32_0, %c0_i32_1 : i32, i32, i32
  }
  func.func @transform_3(%arg0: i32) -> (i32, i32, i32) {
    %c0_i32 = arith.constant 0 : i32
    %c0_i32_0 = arith.constant 0 : i32
    %c0_i32_1 = arith.constant 0 : i32
    %c0_i32_2 = arith.constant 0 : i32
    return %c0_i32, %c0_i32_0, %c0_i32_1 : i32, i32, i32
  }
  func.func @transform_4(%arg0: i32) -> (i32, i32) {
    %c0_i32 = arith.constant 0 : i32
    %c0_i32_0 = arith.constant 0 : i32
    %c0_i32_1 = arith.constant 0 : i32
    return %c0_i32, %c0_i32_0 : i32, i32
  }
  func.func @transform_5(%arg0: i32) -> (i32, i32) {
    %c0_i32 = arith.constant 0 : i32
    %c0_i32_0 = arith.constant 0 : i32
    %c0_i32_1 = arith.constant 0 : i32
    return %c0_i32, %c0_i32_0 : i32, i32
  }
  func.func @transform_6(%arg0: i32) -> (i32, i32, i32) {
    %c0_i32 = arith.constant 0 : i32
    %c0_i32_0 = arith.constant 0 : i32
    %c0_i32_1 = arith.constant 0 : i32
    return %arg0, %c0_i32, %c0_i32_0 : i32, i32, i32
  }
}

</mosaic_0001>

<bundles_post_ra>
// kernel: tpu_custom_call.1
= control target key start
LH: loop header
LB: loop body
LE: loop exit
PB: predicated region body
PF: predicated region fallthrough
CT: control target
= control target key end

     0   :  { %11 = vsyncpa [#allocation3], 0  ;;  %s1542_s0 = inlined_call_operand.vmem [shape: f32[1,8,512], index: 0, kind: input, shape index: {}]   ;;  %s1543_s1 = inlined_call_operand.vmem [shape: f32[16,8], index: 1, kind: input, shape index: {}]   ;;  %s1544_s2 = inlined_call_operand.vmem [shape: f32[2,16,1], index: 2, kind: input, shape index: {}]   ;;  %s1545_s3 = inlined_call_operand.hbm [shape: f32[9,16,512], index: 3, kind: input, shape index: {}]   ;;  %s1546_s4 = inlined_call_operand.vmem [shape: f32[8,16], index: 4, kind: input, shape index: {}]   ;;  %s1547_s5 = inlined_call_operand.vmem [shape: f32[8,1], index: 5, kind: input, shape index: {}]   ;;  %s1548_s6 = inlined_call_operand.hbm [shape: f32[1,8,512], index: 6, kind: output, shape index: {}]  }
   0x1   :  { %12 = vsyncpa [#allocation4], 0  ;;  %s940_s21 = smov [#allocation2]   ;;  %s892_s25 = scalar_lea.hbm %s1545_s3, 9216 }
   0x2   :  { %s24_s22 = sshll.u32 %s940_s21, 4  ;;  %p893_p0 = scmp.ne.s32.totalorder %s1545_s3, %s892_s25  ;;  %s25_s22 = int_to_ptr.vmem [resolvable:$true] %s24_s22 }
   0x3   :  { %p896_p1 = scmp.lt.u32.totalorder %s892_s25, %s1545_s3 }
   0x5   :  { %p898_p2 = pnand %p896_p1, %p893_p0 }
   0x7   :  { %901 = shalt.err (!%p898_p2)
}
   0x8   :  { %s902_s30 = scalar_lea.vmem %s25_s22, 9216  ;;  %p907_p4 = scmp.lt.s32.totalorder %s25_s22, %s25_s22 }
   0x9   :  { %p903_p3 = scmp.ne.s32.totalorder %s25_s22, %s902_s30  ;;  %p908_p5 = scmp.lt.s32.totalorder %s902_s30, %s902_s30 }
   0xb   :  { %p909_p6 = por %p908_p5, %p907_p4 }
   0xd   :  { %p910_p7 = pnand %p909_p6, %p903_p3 }
   0xf   :  { %913 = shalt.err (!%p910_p7)
}
  0x10   :  { %s941_s7 = smov 512   ;;  %s942_s8 = smov 32  }
  0x11   :  { %30 = dma.hbm_to_vmem [thread:$0]  %s1545_s3, 9216, %s25_s22, [#allocation3], %s941_s7, %s941_s7, %s942_s8  }
  0x12   :  { %936 = dma.done.wait [#allocation3], 9216  }
  0x13   :  { %937 = vsyncadd [#allocation3], 4294958080  ;;  %v943_v0 = vmov 0.0   ;;  %v944_v1 = vmov 0   ;;  %v39_v2 = vld [vmem:[%s1542_s0 + $0x8] sm:$0xff]  ;;  %v41_v3 = vld [vmem:[%s1542_s0 + $0x18] sm:$0xff]  ;;  %v250_v59 = vlaneseq }
  0x14   :  { %127 = vmatprep.mubr.f32.mxu0 %v943_v0  ;;  %204 = vmatprep.mubr.f32.mxu1 %v943_v0  ;;  %v38_v4 = vld [vmem:[%s1542_s0] sm:$0xff]  ;;  %vm56_vm0 = vcmask 64512   ;;  %v40_v5 = vld [vmem:[%s1542_s0 + $0x10] sm:$0xff]  ;;  %v861_v8 = vld [vmem:[%s1544_s2 + $0x18] sm:$0xff]  ;;  %s947_s30 = smov 15   ;;  %s948_s7 = smov 1  }
  0x15   :  { %886 = vset.pattern.permute.xlu0 %v944_v1  ;;  %887 = vset.pattern.permute.xlu1 %v944_v1  ;;  %v42_v6 = vld [vmem:[%s1543_s1] sm:$0xff]  ;;  %v43_v9 = vld [vmem:[%s1543_s1 + $0x8] sm:$0xff]  ;;  %v860_v11 = vld [vmem:[%s1544_s2 + $0x10] sm:$0xff]  ;;  %s945_s1 = smov 17   ;;  %s949_s8 = smov 127   ;;  %v1240_v62 = vand.u32 127, %v250_v59 }
  0x16   :  { %63 = vmatprep.subr.mxu0 %v39_v2  ;;  %140 = vmatprep.subr.mxu1 %v41_v3  ;;  %v44_v7 = vld [vmem:[%s1544_s2] sm:$0xff]  ;;  %v45_v10 = vld [vmem:[%s1544_s2 + $0x8] sm:$0xff]  ;;  %s946_s2 = smov 16   ;;  %s950_s9 = smov 113   ;;  %v220_v1 = vld [vmem:[#allocation2 + $0x110] sm:$0xff]  ;;  %vm679_vm9 = vcmask 130048  }
  0x17   :  { %64 = vmatpush1.msra.mxu0 %v38_v4  ;;  %141 = vmatpush1.msra.mxu1 %v40_v5  ;;  %s951_s10 = smov 112   ;;  %s952_s11 = smov 111   ;;  %v673_v36 = vld [vmem:[%s1547_s5] sm:$0xff]  ;;  %vm252_vm1 = vcmp.lt.s32.totalorder %v1240_v62, 17  ;;  %v263_v2 = vld [vmem:[#allocation2 + $0x10] sm:$0xff]  ;;  %vm301_vm2 = vcmp.lt.s32.totalorder %v1240_v62, 16 }
  0x18   :  { %856 = vmatmul.mubr.msk.f32.vlgmr.msra.gmra.mrb[0].mxu0 %vm56_vm0, %v42_v6  ;;  %858 = vmatmul.mubr.msk.f32.vlgmr.msra.gmra.mrb[0].mxu1 %vm56_vm0, %v42_v6  ;;  %v221_v59 = vld [vmem:[#allocation2 + $0x118] sm:$0xff]  ;;  %vm351_vm3 = vcmp.lt.s32.totalorder %v1240_v62, 15  ;;  %vm401_vm4 = vcmp.lt.s32.totalorder %v1240_v62, 1  ;;  %vm451_vm5 = vcmp.lt.s32.totalorder %v1240_v62, 127  ;;  %vm501_vm6 = vcmp.lt.s32.totalorder %v1240_v62, 113  ;;  %s953_s17 = smov [#allocation5]  }
  0x19   :  { %133 = vmatprep.mubr.f32.mxu0 %v943_v0  ;;  %210 = vmatprep.mubr.f32.mxu1 %v943_v0  ;;  %vm551_vm7 = vcmp.lt.s32.totalorder %v1240_v62, 112  ;;  %vm601_vm8 = vcmp.lt.s32.totalorder %v1240_v62, 111  ;;  %s847_s18 = sshll.u32 %s953_s17, 4  ;;  %s848_s18 = int_to_ptr.vmem [resolvable:$true] %s847_s18 }
  0x1a   :  { %48 = vperm.xlu0 %886, %v44_v7   ;;  %645 = vperm.xlu1 %887, %v861_v8   ;;  %v218_v8 = vld [vmem:[#allocation2 + $0x100] sm:$0xff]  ;;  %s914_s23 = scalar_lea.vmem %s848_s18, 512  ;;  %p919_p9 = scmp.lt.s32.totalorder %s848_s18, %s848_s18 }
  0x1b   :  { %p915_p8 = scmp.ne.s32.totalorder %s848_s18, %s914_s23  ;;  %p920_p10 = scmp.lt.s32.totalorder %s914_s23, %s914_s23 }
  0x1c   :  { %857 = vmatmul.mubr.msk.f32.gmra.mrb[2].mxu0 %vm56_vm0, %v43_v9  ;;  %859 = vmatmul.mubr.msk.f32.gmra.mrb[2].mxu1 %vm56_vm0, %v43_v9  ;;  %v261_v9 = vld [vmem:[#allocation2] sm:$0xff] }
  0x1d   :  { %747 = vmatprep.mubr.f32.mxu0 %v943_v0  ;;  %818 = vmatprep.mubr.f32.mxu1 %v943_v0  ;;  %p921_p11 = por %p920_p10, %p919_p9 }
  0x1e   :  { %53 = vperm.xlu0 %886, %v45_v10  }
  0x1f   :  { %p922_p12 = pnand %p921_p11, %p915_p8 }
  0x22   :  { %640 = vperm.xlu0 %886, %v860_v11  }
  0x99   :  { %v49_v12 = vpop.permute.xlu0 %48  ;;  %v1163_v30 = vpop.permute.xlu1 %645 }
  0x9a   :  { %1554 = vst [vmem:[#allocation8_spill] sm:$0xff] %v1163_v30 }
  0x9d   :  { %v54_v20 = vpop.permute.xlu0 %53 }
  0xa1   :  { %v1165_v31 = vpop.permute.xlu0 %640 }
  0xa2   :  { %1555 = vst [vmem:[#allocation9_spill] sm:$0xff] %v1165_v31 }
  0xeb   :  { %v129_v13 = vpop.f32.mrb[0].mxu0  ;;  %v206_v14 = vpop.f32.mrb[0].mxu1 }
  0xec   :  { %v1035_v15 = vadd.f32 %v129_v13, %v49_v12  ;;  %v1037_v16 = vadd.f32 %v206_v14, %v49_v12  ;;  %v131_v17 = vpop.f32.mrb[1].mxu0  ;;  %v208_v18 = vpop.f32.mrb[1].mxu1 }
  0xed   :  { %v1039_v19 = vadd.f32 %v208_v18, %v49_v12  ;;  %v1105_v27 = vadd.f32 %v131_v17, %v49_v12  ;;  %v224_v18 = vld [vmem:[#allocation2 + $0x130] sm:$0xff] }
  0xee   :  { %242 = vrot.lane.b32.xlu0 %v1037_v16, %s945_s1  ;;  %234 = vrot.lane.b32.xlu1 %v1035_v15, %s945_s1  ;;  %v228_v6 = vmul.f32 %v220_v1, %v1037_v16  ;;  %v226_v14 = vmul.f32 %v218_v8, %v1035_v15 }
  0xef   :  { %v135_v21 = vpop.f32.mrb[2].mxu0  ;;  %v212_v22 = vpop.f32.mrb[2].mxu1  ;;  %v229_v8 = vmul.f32 %v221_v59, %v1039_v19  ;;  %v225_v59 = vld [vmem:[#allocation2 + $0x138] sm:$0xff] }
  0xf0   :  { %v1045_v23 = vadd.f32 %v135_v21, %v54_v20  ;;  %v137_v24 = vpop.f32.mrb[3].mxu0  ;;  %v214_v25 = vpop.f32.mrb[3].mxu1  ;;  %v1051_v26 = vadd.f32 %v212_v22, %v54_v20  ;;  %v313_v21 = vld [vmem:[#allocation2 + $0x50] sm:$0xff] }
  0xf1   :  { %v1115_v28 = vadd.f32 %v137_v24, %v54_v20  ;;  %v1121_v29 = vadd.f32 %v214_v25, %v54_v20  ;;  %v264_v20 = vld [vmem:[#allocation2 + $0x18] sm:$0xff]  ;;  %v267_v22 = vld [vmem:[#allocation2 + $0x30] sm:$0xff] }
  0xf2   :  { %285 = vrot.lane.b32.xlu0 %v1035_v15, %s946_s2  ;;  %236 = vrot.lane.b32.xlu1 %v1045_v23, %s945_s1 }
  0xf6   :  { %293 = vrot.lane.b32.xlu0 %v1037_v16, %s946_s2  ;;  %244 = vrot.lane.b32.xlu1 %v1051_v26, %s945_s1 }
  0xfa   :  { %335 = vrot.lane.b32.xlu0 %v1035_v15, %s947_s30  ;;  %287 = vrot.lane.b32.xlu1 %v1045_v23, %s946_s2 }
  0xfe   :  { %343 = vrot.lane.b32.xlu0 %v1037_v16, %s947_s30  ;;  %295 = vrot.lane.b32.xlu1 %v1051_v26, %s946_s2 }
 0x102   :  { %385 = vrot.lane.b32.xlu0 %v1035_v15, %s948_s7  ;;  %337 = vrot.lane.b32.xlu1 %v1045_v23, %s947_s30 }
 0x106   :  { %393 = vrot.lane.b32.xlu0 %v1037_v16, %s948_s7  ;;  %345 = vrot.lane.b32.xlu1 %v1051_v26, %s947_s30 }
 0x10a   :  { %435 = vrot.lane.b32.xlu0 %v1035_v15, %s949_s8  ;;  %387 = vrot.lane.b32.xlu1 %v1045_v23, %s948_s7 }
 0x10e   :  { %443 = vrot.lane.b32.xlu0 %v1037_v16, %s949_s8  ;;  %395 = vrot.lane.b32.xlu1 %v1051_v26, %s948_s7 }
 0x112   :  { %485 = vrot.lane.b32.xlu0 %v1035_v15, %s950_s9  ;;  %437 = vrot.lane.b32.xlu1 %v1045_v23, %s949_s8 }
 0x116   :  { %493 = vrot.lane.b32.xlu0 %v1037_v16, %s950_s9  ;;  %445 = vrot.lane.b32.xlu1 %v1051_v26, %s949_s8 }
 0x11a   :  { %535 = vrot.lane.b32.xlu0 %v1035_v15, %s951_s10  ;;  %487 = vrot.lane.b32.xlu1 %v1045_v23, %s950_s9 }
 0x11e   :  { %543 = vrot.lane.b32.xlu0 %v1037_v16, %s951_s10  ;;  %495 = vrot.lane.b32.xlu1 %v1051_v26, %s950_s9 }
 0x122   :  { %585 = vrot.lane.b32.xlu0 %v1035_v15, %s952_s11  ;;  %537 = vrot.lane.b32.xlu1 %v1045_v23, %s951_s10 }
 0x126   :  { %593 = vrot.lane.b32.xlu0 %v1037_v16, %s952_s11  ;;  %545 = vrot.lane.b32.xlu1 %v1051_v26, %s951_s10 }
 0x12a   :  { %238 = vrot.lane.b32.xlu0 %v1105_v27, %s945_s1  ;;  %587 = vrot.lane.b32.xlu1 %v1045_v23, %s952_s11 }
 0x12e   :  { %246 = vrot.lane.b32.xlu0 %v1039_v19, %s945_s1  ;;  %595 = vrot.lane.b32.xlu1 %v1051_v26, %s952_s11 }
 0x132   :  { %289 = vrot.lane.b32.xlu0 %v1105_v27, %s946_s2  ;;  %240 = vrot.lane.b32.xlu1 %v1115_v28, %s945_s1 }
 0x136   :  { %297 = vrot.lane.b32.xlu0 %v1039_v19, %s946_s2  ;;  %248 = vrot.lane.b32.xlu1 %v1121_v29, %s945_s1 }
 0x13a   :  { %339 = vrot.lane.b32.xlu0 %v1105_v27, %s947_s30  ;;  %291 = vrot.lane.b32.xlu1 %v1115_v28, %s946_s2 }
 0x13e   :  { %347 = vrot.lane.b32.xlu0 %v1039_v19, %s947_s30  ;;  %299 = vrot.lane.b32.xlu1 %v1121_v29, %s946_s2 }
 0x142   :  { %389 = vrot.lane.b32.xlu0 %v1105_v27, %s948_s7  ;;  %341 = vrot.lane.b32.xlu1 %v1115_v28, %s947_s30 }
 0x146   :  { %397 = vrot.lane.b32.xlu0 %v1039_v19, %s948_s7  ;;  %349 = vrot.lane.b32.xlu1 %v1121_v29, %s947_s30 }
 0x14a   :  { %439 = vrot.lane.b32.xlu0 %v1105_v27, %s949_s8  ;;  %391 = vrot.lane.b32.xlu1 %v1115_v28, %s948_s7 }
 0x14e   :  { %447 = vrot.lane.b32.xlu0 %v1039_v19, %s949_s8  ;;  %399 = vrot.lane.b32.xlu1 %v1121_v29, %s948_s7 }
 0x152   :  { %489 = vrot.lane.b32.xlu0 %v1105_v27, %s950_s9  ;;  %441 = vrot.lane.b32.xlu1 %v1115_v28, %s949_s8 }
 0x156   :  { %497 = vrot.lane.b32.xlu0 %v1039_v19, %s950_s9  ;;  %449 = vrot.lane.b32.xlu1 %v1121_v29, %s949_s8 }
 0x15a   :  { %539 = vrot.lane.b32.xlu0 %v1105_v27, %s951_s10  ;;  %491 = vrot.lane.b32.xlu1 %v1115_v28, %s950_s9 }
 0x15e   :  { %547 = vrot.lane.b32.xlu0 %v1039_v19, %s951_s10  ;;  %499 = vrot.lane.b32.xlu1 %v1121_v29, %s950_s9 }
 0x160   :  { %v243_v32 = vpop.permute.xlu0 %242  ;;  %v1171_v33 = vpop.permute.xlu1 %234 }
 0x162   :  { %589 = vrot.lane.b32.xlu0 %v1105_v27, %s952_s11  ;;  %541 = vrot.lane.b32.xlu1 %v1115_v28, %s951_s10 }
 0x164   :  { %v1177_v34 = vpop.permute.xlu0 %285  ;;  %v1179_v35 = vpop.permute.xlu1 %236 }
 0x166   :  { %597 = vrot.lane.b32.xlu0 %v1039_v19, %s952_s11  ;;  %549 = vrot.lane.b32.xlu1 %v1121_v29, %s951_s10 }
 0x168   :  { %v1188_v37 = vpop.permute.xlu0 %293  ;;  %v1190_v38 = vpop.permute.xlu1 %244 }
 0x16a   :  { %676 = vperm.xlu0 %886, %v673_v36   ;;  %591 = vrot.lane.b32.xlu1 %v1115_v28, %s952_s11 }
 0x16c   :  { %v1194_v39 = vpop.permute.xlu0 %335  ;;  %v1196_v40 = vpop.permute.xlu1 %287 }
 0x16e   :  { %599 = vrot.lane.b32.xlu1 %v1121_v29, %s952_s11 }
 0x170   :  { %v1200_v41 = vpop.permute.xlu0 %343  ;;  %v1202_v42 = vpop.permute.xlu1 %295 }
 0x174   :  { %v1204_v43 = vpop.permute.xlu0 %385  ;;  %v1206_v44 = vpop.permute.xlu1 %337 }
 0x178   :  { %v1208_v45 = vpop.permute.xlu0 %393  ;;  %v1210_v46 = vpop.permute.xlu1 %345 }
 0x17c   :  { %v1212_v47 = vpop.permute.xlu0 %435  ;;  %v1214_v48 = vpop.permute.xlu1 %387 }
 0x180   :  { %v1216_v49 = vpop.permute.xlu0 %443  ;;  %v1218_v50 = vpop.permute.xlu1 %395 }
 0x184   :  { %v1220_v51 = vpop.permute.xlu0 %485  ;;  %v1222_v52 = vpop.permute.xlu1 %437 }
 0x188   :  { %v1224_v53 = vpop.permute.xlu0 %493  ;;  %v1226_v54 = vpop.permute.xlu1 %445 }
 0x18c   :  { %v1228_v55 = vpop.permute.xlu0 %535  ;;  %v1230_v56 = vpop.permute.xlu1 %487 }
 0x190   :  { %v1232_v57 = vpop.permute.xlu0 %543  ;;  %v1234_v58 = vpop.permute.xlu1 %495 }
 0x194   :  { %v1236_v60 = vpop.permute.xlu0 %585  ;;  %v1238_v61 = vpop.permute.xlu1 %537 }
 0x195   :  { %1556 = vst [vmem:[#allocation10_spill] sm:$0xff] %v1238_v61 }
 0x198   :  { %v1242_v63 = vpop.permute.xlu0 %593  ;;  %v1244_v0 = vpop.permute.xlu1 %545 }
 0x19c   :  { %v239_v3 = vpop.permute.xlu0 %238  ;;  %v1247_v4 = vpop.permute.xlu1 %587 }
 0x19d   :  { %1557 = vst [vmem:[#allocation11_spill] sm:$0xff] %v1247_v4  ;;  %v255_v5 = vsel %vm252_vm1, %v239_v3, %v243_v32  ;;  %v257_v4 = vsel %vm252_vm1, %v1171_v33, %v239_v3  ;;  %v413_v3 = vld [vmem:[#allocation2 + $0xd0] sm:$0xff] }
 0x19e   :  { %v271_v7 = vmul.f32 %v263_v2, %v255_v5 }
 0x1a0   :  { %v279_v10 = vadd.f32 %v271_v7, %v228_v6  ;;  %v247_v11 = vpop.permute.xlu0 %246  ;;  %v1252_v12 = vpop.permute.xlu1 %595  ;;  %v314_v7 = vld [vmem:[#allocation2 + $0x58] sm:$0xff] }
 0x1a1   :  { %1558 = vst [vmem:[#allocation12_spill] sm:$0xff] %v1252_v12  ;;  %v259_v13 = vsel %vm252_vm1, %v247_v11, %v1171_v33  ;;  %v253_v16 = vsel %vm252_vm1, %v243_v32, %v247_v11  ;;  %v232_v32 = vmul.f32 %v224_v18, %v1051_v26  ;;  %v268_v26 = vld [vmem:[#allocation2 + $0x38] sm:$0xff]  ;;  %v317_v18 = vld [vmem:[#allocation2 + $0x70] sm:$0xff]  ;;  %v362_v12 = vld [vmem:[#allocation2 + $0x88] sm:$0xff] }
 0x1a2   :  { %v269_v17 = vmul.f32 %v261_v9, %v259_v13  ;;  %v272_v2 = vmul.f32 %v264_v20, %v253_v16 }
 0x1a4   :  { %v1261_v24 = vadd.f32 %v269_v17, %v226_v14  ;;  %v290_v25 = vpop.permute.xlu0 %289  ;;  %v1263_v36 = vpop.permute.xlu1 %240  ;;  %v280_v30 = vadd.f32 %v272_v2, %v229_v8 }
 0x1a5   :  { %v304_v15 = vsel %vm301_vm2, %v290_v25, %v1188_v37  ;;  %v256_v1 = vsel %vm252_vm1, %v1263_v36, %v1190_v38  ;;  %v306_v33 = vsel %vm301_vm2, %v1177_v34, %v290_v25 }
 0x1a6   :  { %v321_v5 = vmul.f32 %v313_v21, %v304_v15  ;;  %v275_v6 = vmul.f32 %v267_v22, %v256_v1 }
 0x1a8   :  { %v329_v9 = vadd.f32 %v321_v5, %v279_v10  ;;  %v283_v11 = vadd.f32 %v275_v6, %v232_v32  ;;  %v1274_v13 = vpop.permute.xlu0 %297  ;;  %v1276_v14 = vpop.permute.xlu1 %248  ;;  %v363_v10 = vld [vmem:[#allocation2 + $0x90] sm:$0xff]  ;;  %v318_v32 = vld [vmem:[#allocation2 + $0x78] sm:$0xff] }
 0x1a9   :  { %v302_v17 = vsel %vm301_vm2, %v1188_v37, %v1274_v13  ;;  %v254_v19 = vsel %vm252_vm1, %v1190_v38, %v1276_v14  ;;  %v364_v38 = vld [vmem:[#allocation2 + $0x98] sm:$0xff] }
 0x1aa   :  { %v322_v20 = vmul.f32 %v314_v7, %v302_v17  ;;  %v276_v1 = vmul.f32 %v268_v26, %v254_v19 }
 0x1ac   :  { %v330_v16 = vadd.f32 %v322_v20, %v280_v30  ;;  %v340_v21 = vpop.permute.xlu0 %339  ;;  %v1287_v22 = vpop.permute.xlu1 %291  ;;  %v233_v30 = vmul.f32 %v225_v59, %v1121_v29  ;;  %v262_v20 = vld [vmem:[#allocation2 + $0x8] sm:$0xff]  ;;  %v367_v59 = vld [vmem:[#allocation2 + $0xb0] sm:$0xff] }
 0x1ad   :  { %v354_v37 = vsel %vm351_vm3, %v340_v21, %v1200_v41  ;;  %v305_v15 = vsel %vm301_vm2, %v1287_v22, %v1202_v42 }
 0x1ae   :  { %v371_v2 = vmul.f32 %v363_v10, %v354_v37  ;;  %v325_v5 = vmul.f32 %v317_v18, %v305_v15  ;;  %v312_v18 = vld [vmem:[#allocation2 + $0x48] sm:$0xff]  ;;  %v270_v37 = vmul.f32 %v262_v20, %v257_v4 }
 0x1af   :  { %v320_v4 = vmul.f32 %v312_v18, %v306_v33  ;;  %v462_v33 = vld [vmem:[#allocation2 + $0x148] sm:$0xff] }
 0x1b0   :  { %v379_v6 = vadd.f32 %v371_v2, %v329_v9  ;;  %v333_v7 = vadd.f32 %v325_v5, %v283_v11  ;;  %v1297_v8 = vpop.permute.xlu0 %347  ;;  %v1299_v17 = vpop.permute.xlu1 %299  ;;  %v219_v9 = vld [vmem:[#allocation2 + $0x108] sm:$0xff]  ;;  %v284_v11 = vadd.f32 %v276_v1, %v233_v30 }
 0x1b1   :  { %v352_v26 = vsel %vm351_vm3, %v1200_v41, %v1297_v8  ;;  %v303_v29 = vsel %vm301_vm2, %v1202_v42, %v1299_v17  ;;  %v356_v42 = vsel %vm351_vm3, %v1194_v39, %v340_v21  ;;  %v412_v30 = vld [vmem:[#allocation2 + $0xc8] sm:$0xff]  ;;  %v368_v21 = vld [vmem:[#allocation2 + $0xb8] sm:$0xff] }
 0x1b2   :  { %v372_v19 = vmul.f32 %v364_v38, %v352_v26  ;;  %v326_v10 = vmul.f32 %v318_v32, %v303_v29  ;;  %v227_v38 = vmul.f32 %v219_v9, %v1105_v27  ;;  %v414_v26 = vld [vmem:[#allocation2 + $0xd8] sm:$0xff] }
 0x1b4   :  { %v380_v41 = vadd.f32 %v372_v19, %v330_v16  ;;  %v334_v15 = vadd.f32 %v326_v10, %v284_v11  ;;  %v390_v2 = vpop.permute.xlu0 %389  ;;  %v342_v5 = vpop.permute.xlu1 %341  ;;  %v278_v29 = vadd.f32 %v270_v37, %v227_v38  ;;  %v370_v11 = vmul.f32 %v362_v12, %v356_v42  ;;  %v266_v37 = vld [vmem:[#allocation2 + $0x28] sm:$0xff] }
 0x1b5   :  { %v404_v1 = vsel %vm401_vm4, %v390_v2, %v1208_v45  ;;  %v355_v25 = vsel %vm351_vm3, %v342_v5, %v1210_v46  ;;  %v406_v20 = vsel %vm401_vm4, %v1204_v43, %v390_v2 }
 0x1b6   :  { %v421_v16 = vmul.f32 %v413_v3, %v404_v1  ;;  %v375_v32 = vmul.f32 %v367_v59, %v355_v25  ;;  %v328_v18 = vadd.f32 %v320_v4, %v278_v29  ;;  %v420_v12 = vmul.f32 %v412_v30, %v406_v20  ;;  %v417_v3 = vld [vmem:[#allocation2 + $0xf0] sm:$0xff]  ;;  %v223_v59 = vld [vmem:[#allocation2 + $0x128] sm:$0xff] }
 0x1b7   :  { %v231_v30 = vmul.f32 %v223_v59, %v1115_v28  ;;  %v463_v29 = vld [vmem:[#allocation2 + $0x150] sm:$0xff]  ;;  %v358_v28 = vsel %vm351_vm3, %v1297_v8, %v1194_v39  ;;  %v222_v39 = vld [vmem:[#allocation2 + $0x120] sm:$0xff] }
 0x1b8   :  { %v429_v19 = vadd.f32 %v421_v16, %v379_v6  ;;  %v383_v10 = vadd.f32 %v375_v32, %v333_v7  ;;  %v1329_v31 = vpop.permute.xlu0 %397  ;;  %v1331_v61 = vpop.permute.xlu1 %349  ;;  %v378_v2 = vadd.f32 %v370_v11, %v328_v18  ;;  %v311_v16 = vld [vmem:[#allocation2 + $0x40] sm:$0xff]  ;;  %v418_v11 = vld [vmem:[#allocation2 + $0xf8] sm:$0xff] }
 0x1b9   :  { %v402_v27 = vsel %vm401_vm4, %v1208_v45, %v1329_v31  ;;  %v353_v9 = vsel %vm351_vm3, %v1210_v46, %v1331_v61  ;;  %v258_v45 = vsel %vm252_vm1, %v1179_v35, %v1263_v36  ;;  %v308_v36 = vsel %vm301_vm2, %v1274_v13, %v1177_v34  ;;  %v361_v13 = vld [vmem:[#allocation2 + $0x80] sm:$0xff] }
 0x1ba   :  { %v422_v6 = vmul.f32 %v414_v26, %v402_v27  ;;  %v376_v7 = vmul.f32 %v368_v21, %v353_v9  ;;  %v274_v20 = vmul.f32 %v266_v37, %v258_v45  ;;  %v316_v26 = vld [vmem:[#allocation2 + $0x68] sm:$0xff]  ;;  %v307_v21 = vsel %vm301_vm2, %v1196_v40, %v1287_v22  ;;  %v265_v27 = vld [vmem:[#allocation2 + $0x20] sm:$0xff] }
 0x1bb   :  { %v260_v34 = vsel %vm252_vm1, %v1276_v14, %v1179_v35  ;;  %v319_v22 = vmul.f32 %v311_v16, %v308_v36  ;;  %v324_v8 = vmul.f32 %v316_v26, %v307_v21  ;;  %v369_v45 = vmul.f32 %v361_v13, %v358_v28 }
 0x1bc   :  { %v1346_v42 = vadd.f32 %v422_v6, %v380_v41  ;;  %v384_v1 = vadd.f32 %v376_v7, %v334_v15  ;;  %v1348_v46 = vpop.permute.xlu0 %439  ;;  %v392_v25 = vpop.permute.xlu1 %391  ;;  %v428_v41 = vadd.f32 %v420_v12, %v378_v2  ;;  %v366_v7 = vld [vmem:[#allocation2 + $0xa8] sm:$0xff]  ;;  %v282_v59 = vadd.f32 %v274_v20, %v231_v30  ;;  %v411_v20 = vld [vmem:[#allocation2 + $0xc0] sm:$0xff] }
 0x1bd   :  { %v454_v38 = vsel %vm451_vm5, %v1348_v46, %v1216_v49  ;;  %v405_v4 = vsel %vm401_vm4, %v392_v25, %v1218_v50  ;;  %v273_v37 = vmul.f32 %v265_v27, %v260_v34  ;;  %v512_v2 = vld [vmem:[#allocation2 + $0x188] sm:$0xff]  ;;  %v230_v30 = vmul.f32 %v222_v39, %v1045_v23  ;;  %v513_v27 = vld [vmem:[#allocation2 + $0x190] sm:$0xff]  ;;  %v415_v39 = vld [vmem:[#allocation2 + $0xe0] sm:$0xff] }
 0x1be   :  { %v470_v15 = vmul.f32 %v462_v33, %v454_v38  ;;  %v425_v32 = vmul.f32 %v417_v3, %v405_v4  ;;  %v357_v33 = vsel %vm351_vm3, %v1206_v44, %v342_v5  ;;  %v309_v5 = vsel %vm301_vm2, %v1299_v17, %v1196_v40  ;;  %v416_v4 = vld [vmem:[#allocation2 + $0xe8] sm:$0xff]  ;;  %v467_v34 = vld [vmem:[#allocation2 + $0x170] sm:$0xff] }
 0x1bf   :  { %v374_v38 = vmul.f32 %v366_v7, %v357_v33  ;;  %v332_v17 = vadd.f32 %v324_v8, %v282_v59 }
 0x1c0   :  { %v478_v9 = vadd.f32 %v470_v15, %v428_v41  ;;  %v1374_v18 = vadd.f32 %v425_v32, %v383_v10  ;;  %v448_v12 = vpop.permute.xlu0 %447  ;;  %v400_v6 = vpop.permute.xlu1 %399  ;;  %v327_v32 = vadd.f32 %v319_v22, %v1261_v24  ;;  %v359_v24 = vsel %vm351_vm3, %v1331_v61, %v1206_v44 }
 0x1c1   :  { %v452_v35 = vsel %vm451_vm5, %v1216_v49, %v448_v12  ;;  %v403_v14 = vsel %vm401_vm4, %v1218_v50, %v400_v6  ;;  %v315_v49 = vld [vmem:[#allocation2 + $0x60] sm:$0xff]  ;;  %v407_v50 = vsel %vm401_vm4, %v1214_v48, %v392_v25  ;;  %v281_v25 = vadd.f32 %v273_v37, %v230_v30 }
 0x1c2   :  { %v471_v10 = vmul.f32 %v463_v29, %v452_v35  ;;  %v426_v3 = vmul.f32 %v418_v11, %v403_v14  ;;  %v323_v26 = vmul.f32 %v315_v49, %v309_v5  ;;  %v424_v21 = vmul.f32 %v416_v4, %v407_v50  ;;  %v466_v29 = vld [vmem:[#allocation2 + $0x168] sm:$0xff]  ;;  %v511_v49 = vld [vmem:[#allocation2 + $0x180] sm:$0xff] }
 0x1c3   :  { %v377_v13 = vadd.f32 %v369_v45, %v327_v32  ;;  %v382_v28 = vadd.f32 %v374_v38, %v332_v17  ;;  %v409_v8 = vsel %vm401_vm4, %v400_v6, %v1214_v48  ;;  %v458_v45 = vsel %vm451_vm5, %v448_v12, %v1212_v47  ;;  %v516_v5 = vld [vmem:[#allocation2 + $0x1a8] sm:$0xff]  ;;  %v465_v38 = vld [vmem:[#allocation2 + $0x160] sm:$0xff] }
 0x1c4   :  { %v479_v16 = vadd.f32 %v471_v10, %v429_v19  ;;  %v1393_v36 = vadd.f32 %v426_v3, %v384_v1  ;;  %v490_v41 = vpop.permute.xlu0 %489  ;;  %v442_v15 = vpop.permute.xlu1 %441  ;;  %v408_v19 = vsel %vm401_vm4, %v1329_v31, %v1204_v43  ;;  %v365_v1 = vld [vmem:[#allocation2 + $0xa0] sm:$0xff]  ;;  %v456_v43 = vsel %vm451_vm5, %v1212_v47, %v1348_v46 }
 0x1c5   :  { %v504_v40 = vsel %vm501_vm6, %v490_v41, %v1224_v53  ;;  %v455_v11 = vsel %vm451_vm5, %v442_v15, %v1226_v54  ;;  %v461_v31 = vld [vmem:[#allocation2 + $0x140] sm:$0xff]  ;;  %v419_v7 = vmul.f32 %v411_v20, %v408_v19  ;;  %v373_v33 = vmul.f32 %v365_v1, %v359_v24 }
 0x1c6   :  { %v520_v23 = vmul.f32 %v512_v2, %v504_v40  ;;  %v474_v10 = vmul.f32 %v466_v29, %v455_v11  ;;  %v331_v3 = vadd.f32 %v323_v26, %v281_v25  ;;  %v469_v59 = vmul.f32 %v461_v31, %v456_v43  ;;  %v464_v2 = vld [vmem:[#allocation2 + $0x158] sm:$0xff]  ;;  %v517_v25 = vld [vmem:[#allocation2 + $0x1b0] sm:$0xff] }
 0x1c7   :  { %v432_v37 = vadd.f32 %v424_v21, %v382_v28  ;;  %v457_v48 = vsel %vm451_vm5, %v1222_v52, %v442_v15  ;;  %v427_v30 = vadd.f32 %v419_v7, %v377_v13  ;;  %v423_v47 = vmul.f32 %v415_v39, %v409_v8  ;;  %v514_v13 = vld [vmem:[#allocation2 + $0x198] sm:$0xff] }
 0x1c8   :  { %v528_v44 = vadd.f32 %v520_v23, %v478_v9  ;;  %v498_v61 = vpop.permute.xlu0 %497  ;;  %v450_v22 = vpop.permute.xlu1 %449  ;;  %v381_v40 = vadd.f32 %v373_v33, %v331_v3  ;;  %v472_v15 = vmul.f32 %v464_v2, %v458_v45  ;;  %v473_v1 = vmul.f32 %v465_v38, %v457_v48  ;;  %v563_v23 = vld [vmem:[#allocation2 + $0x1d0] sm:$0xff]  ;;  %v468_v8 = vld [vmem:[#allocation2 + $0x178] sm:$0xff] }
 0x1c9   :  { %v502_v35 = vsel %vm501_vm6, %v1224_v53, %v498_v61  ;;  %v453_v14 = vsel %vm451_vm5, %v1226_v54, %v450_v22  ;;  %v562_v53 = vld [vmem:[#allocation2 + $0x1c8] sm:$0xff]  ;;  %v506_v54 = vsel %vm501_vm6, %v1220_v51, %v490_v41  ;;  %v482_v17 = vadd.f32 %v474_v10, %v432_v37  ;;  %v564_v45 = vld [vmem:[#allocation2 + $0x1d8] sm:$0xff] }
 0x1ca   :  { %v521_v46 = vmul.f32 %v513_v27, %v502_v35  ;;  %v475_v9 = vmul.f32 %v467_v34, %v453_v14  ;;  %v477_v26 = vadd.f32 %v469_v59, %v427_v30  ;;  %v431_v34 = vadd.f32 %v423_v47, %v381_v40  ;;  %v612_v59 = vld [vmem:[#allocation2 + $0x208] sm:$0xff]  ;;  %v613_v47 = vld [vmem:[#allocation2 + $0x210] sm:$0xff] }
 0x1cb   :  { %v508_v28 = vsel %vm501_vm6, %v498_v61, %v1220_v51  ;;  %v480_v35 = vadd.f32 %v472_v15, %v1346_v42  ;;  %v459_v51 = vsel %vm451_vm5, %v450_v22, %v1222_v52  ;;  %v611_v61 = vld [vmem:[#allocation2 + $0x200] sm:$0xff]  ;;  %v567_v15 = vld [vmem:[#allocation2 + $0x1f0] sm:$0xff] }
 0x1cc   :  { %v529_v6 = vadd.f32 %v521_v46, %v479_v16  ;;  %v483_v4 = vadd.f32 %v475_v9, %v1374_v18  ;;  %v540_v50 = vpop.permute.xlu0 %539  ;;  %v492_v32 = vpop.permute.xlu1 %491  ;;  %v519_v16 = vmul.f32 %v511_v49, %v506_v54  ;;  %v561_v18 = vld [vmem:[#allocation2 + $0x1c0] sm:$0xff]  ;;  %v481_v39 = vadd.f32 %v473_v1, %v431_v34  ;;  %v518_v54 = vld [vmem:[#allocation2 + $0x1b8] sm:$0xff] }
 0x1cd   :  { %v554_v12 = vsel %vm551_vm7, %v540_v50, %v1232_v57  ;;  %v505_v41 = vsel %vm501_vm6, %v492_v32, %v1234_v58  ;;  %v556_v24 = vsel %vm551_vm7, %v1228_v55, %v540_v50  ;;  %v522_v10 = vmul.f32 %v514_v13, %v508_v28  ;;  %v515_v46 = vld [vmem:[#allocation2 + $0x1a0] sm:$0xff] }
 0x1ce   :  { %v570_v20 = vmul.f32 %v562_v53, %v554_v12  ;;  %v524_v19 = vmul.f32 %v516_v5, %v505_v41  ;;  %v569_v7 = vmul.f32 %v561_v18, %v556_v24  ;;  %v527_v14 = vadd.f32 %v519_v16, %v477_v26  ;;  %v565_v50 = vld [vmem:[#allocation2 + $0x1e0] sm:$0xff]  ;;  %v614_v12 = vld [vmem:[#allocation2 + $0x218] sm:$0xff] }
 0x1cf   :  { %v476_v2 = vmul.f32 %v468_v8, %v459_v51  ;;  %v530_v41 = vadd.f32 %v522_v10, %v480_v35  ;;  %v568_v18 = vld [vmem:[#allocation2 + $0x1f8] sm:$0xff] }
 0x1d0   :  { %v1444_v21 = vadd.f32 %v570_v20, %v528_v44  ;;  %v532_v29 = vadd.f32 %v524_v19, %v482_v17  ;;  %v548_v11 = vpop.permute.xlu0 %547  ;;  %v500_v27 = vpop.permute.xlu1 %499  ;;  %v577_v49 = vadd.f32 %v569_v7, %v527_v14  ;;  %v1561_v14 = vld [vmem:[#allocation12_spill] sm:$0xff]  ;;  %v1562_v51 = vld [vmem:[#allocation11_spill] sm:$0xff] }
 0x1d1   :  { %v552_v31 = vsel %vm551_vm7, %v1232_v57, %v548_v11  ;;  %v503_v43 = vsel %vm501_vm6, %v1234_v58, %v500_v27  ;;  %v566_v57 = vld [vmem:[#allocation2 + $0x1e8] sm:$0xff]  ;;  %v507_v58 = vsel %vm501_vm6, %v1230_v56, %v492_v32  ;;  %v558_v53 = vsel %vm551_vm7, %v548_v11, %v1228_v55  ;;  %v1559_v32 = vld [vmem:[#allocation10_spill] sm:$0xff] }
 0x1d2   :  { %v571_v44 = vmul.f32 %v563_v23, %v552_v31  ;;  %v525_v33 = vmul.f32 %v517_v25, %v503_v43  ;;  %v509_v55 = vsel %vm501_vm6, %v500_v27, %v1230_v56  ;;  %v572_v40 = vmul.f32 %v564_v45, %v558_v53  ;;  %v1560_v31 = vld [vmem:[#allocation9_spill] sm:$0xff] }
 0x1d3   :  { %v526_v25 = vmul.f32 %v518_v54, %v509_v55  ;;  %v484_v27 = vadd.f32 %v476_v2, %v1393_v36  ;;  %v1563_v2 = vld [vmem:[#allocation8_spill] sm:$0xff] }
 0x1d4   :  { %v579_v9 = vadd.f32 %v571_v44, %v529_v6  ;;  %v533_v3 = vadd.f32 %v525_v33, %v483_v4  ;;  %v590_v37 = vpop.permute.xlu0 %589  ;;  %v542_v42 = vpop.permute.xlu1 %541  ;;  %v523_v6 = vmul.f32 %v515_v46, %v507_v58  ;;  %v580_v28 = vadd.f32 %v572_v40, %v530_v41  ;;  %v616_v44 = vld [vmem:[#allocation2 + $0x228] sm:$0xff]  ;;  %v617_v58 = vld [vmem:[#allocation2 + $0x230] sm:$0xff] }
 0x1d5   :  { %v604_v52 = vsel %vm601_vm8, %v590_v37, %v1242_v63  ;;  %v606_v22 = vsel %vm601_vm8, %v1236_v60, %v590_v37  ;;  %v555_v5 = vsel %vm551_vm7, %v542_v42, %v1244_v0  ;;  %v557_v30 = vsel %vm551_vm7, %v1559_v32, %v542_v42 }
 0x1d6   :  { %v619_v38 = vmul.f32 %v611_v61, %v606_v22  ;;  %v574_v48 = vmul.f32 %v566_v57, %v555_v5  ;;  %v620_v4 = vmul.f32 %v612_v59, %v604_v52  ;;  %v573_v26 = vmul.f32 %v565_v50, %v557_v30 }
 0x1d8   :  { %v627_v17 = vadd.f32 %v619_v38, %v577_v49  ;;  %v582_v20 = vadd.f32 %v574_v48, %v532_v29  ;;  %v598_v19 = vpop.permute.xlu0 %597  ;;  %v550_v16 = vpop.permute.xlu1 %549  ;;  %v628_v34 = vadd.f32 %v620_v4, %v1444_v21 }
 0x1d9   :  { %v602_v1 = vsel %vm601_vm8, %v1242_v63, %v598_v19  ;;  %v608_v56 = vsel %vm601_vm8, %v598_v19, %v1236_v60  ;;  %v553_v24 = vsel %vm551_vm7, %v1244_v0, %v550_v16  ;;  %v559_v23 = vsel %vm551_vm7, %v550_v16, %v1559_v32  ;;  %v615_v60 = vld [vmem:[#allocation2 + $0x220] sm:$0xff] }
 0x1da   :  { %v621_v29 = vmul.f32 %v613_v47, %v602_v1  ;;  %v622_v11 = vmul.f32 %v614_v12, %v608_v56  ;;  %v531_v63 = vadd.f32 %v523_v6, %v481_v39  ;;  %v575_v13 = vmul.f32 %v567_v15, %v553_v24 }
 0x1db   :  { %v648_v43 = vadd.f32 %v1560_v31, %v627_v17  ;;  %v576_v0 = vmul.f32 %v568_v18, %v559_v23  ;;  %v534_v39 = vadd.f32 %v526_v25, %v484_v27  ;;  %v649_v10 = vadd.f32 %v1560_v31, %v628_v34  ;;  %v672_v25 = vld [vmem:[%s1546_s4] sm:$0xff] }
 0x1dc   :  { %v629_v7 = vadd.f32 %v621_v29, %v579_v9  ;;  %v592_v33 = vpop.permute.xlu1 %591  ;;  %v583_v35 = vadd.f32 %v575_v13, %v533_v3  ;;  %v581_v21 = vadd.f32 %v573_v26, %v531_v63  ;;  %v630_v61 = vadd.f32 %v622_v11, %v580_v28  ;;  %v618_v9 = vld [vmem:[#allocation2 + $0x238] sm:$0xff] }
 0x1dd   :  { %v605_v8 = vsel %vm601_vm8, %v592_v33, %v1561_v14  ;;  %v607_v36 = vsel %vm601_vm8, %v1562_v51, %v592_v33  ;;  %v656_v59 = vmax.f32 %v648_v43, 0.0  ;;  %v584_v37 = vadd.f32 %v576_v0, %v534_v39 }
 0x1de   :  { %v623_v57 = vmul.f32 %v615_v60, %v607_v36  ;;  %v624_v46 = vmul.f32 %v616_v44, %v605_v8  ;;  %v650_v45 = vadd.f32 %v1560_v31, %v629_v7  ;;  %v651_v5 = vadd.f32 %v1560_v31, %v630_v61  ;;  %v889_v36 = vld [vmem:[%s1542_s0 + $0x8] sm:$0xff] }
 0x1df   :  { %v657_v6 = vmax.f32 %v649_v10, 0.0  ;;  %v664_v32 = vmin.f32 %v656_v59, 6.0 }
 0x1e0   :  { %v631_v3 = vadd.f32 %v623_v57, %v581_v21  ;;  %v600_v42 = vpop.permute.xlu1 %599  ;;  %v632_v53 = vadd.f32 %v624_v46, %v582_v20  ;;  %v658_v30 = vmax.f32 %v650_v45, 0.0  ;;  %v659_v40 = vmax.f32 %v651_v5, 0.0  ;;  %v890_v57 = vld [vmem:[%s1542_s0 + $0x10] sm:$0xff]  ;;  %v891_v46 = vld [vmem:[%s1542_s0 + $0x18] sm:$0xff] }
 0x1e1   :  { %v603_v52 = vsel %vm601_vm8, %v1561_v14, %v600_v42  ;;  %v609_v22 = vsel %vm601_vm8, %v600_v42, %v1562_v51  ;;  %v665_v17 = vmin.f32 %v657_v6, 6.0  ;;  %v888_v14 = vld [vmem:[%s1542_s0] sm:$0xff] }
 0x1e2   :  { %v652_v49 = vadd.f32 %v1563_v2, %v631_v3  ;;  %v625_v54 = vmul.f32 %v617_v58, %v603_v52  ;;  %v626_v38 = vmul.f32 %v618_v9, %v609_v22  ;;  %v653_v48 = vadd.f32 %v1563_v2, %v632_v53 }
 0x1e3   :  { %v666_v56 = vmin.f32 %v658_v30, 6.0  ;;  %v667_v24 = vmin.f32 %v659_v40, 6.0 }
 0x1e4   :  { %v660_v55 = vmax.f32 %v652_v49, 0.0  ;;  %v633_v4 = vadd.f32 %v625_v54, %v583_v35  ;;  %v634_v50 = vadd.f32 %v626_v38, %v584_v37  ;;  %v661_v47 = vmax.f32 %v653_v48, 0.0 }
 0x1e6   :  { %v668_v12 = vmin.f32 %v660_v55, 6.0  ;;  %v654_v41 = vadd.f32 %v1563_v2, %v633_v4  ;;  %v655_v62 = vadd.f32 %v1563_v2, %v634_v50  ;;  %v669_v20 = vmin.f32 %v661_v47, 6.0 }
 0x1e8   :  { %v662_v19 = vmax.f32 %v654_v41, 0.0  ;;  %v866_v15 = vpack.c.bf16 %v668_v12, %v664_v32  ;;  %v663_v16 = vmax.f32 %v655_v62, 0.0  ;;  %v864_v1 = vpack.c.bf16 %v669_v20, %v665_v17 }
 0x1e9   :  { %v677_v11 = vpop.permute.xlu0 %676 }
 0x1ea   :  { %v670_v18 = vmin.f32 %v662_v19, 6.0  ;;  %v671_v23 = vmin.f32 %v663_v16, 6.0  ;;  %865 = vmatprep.subr.bf16.mxu0 %v864_v1 }
 0x1eb   :  { %867 = vmatpush1.bf16.msra.mxu0 %v866_v15 }
 0x1ec   :  { %v868_v26 = vpack.c.bf16 %v671_v23, %v667_v24  ;;  %v870_v29 = vpack.c.bf16 %v670_v18, %v666_v56 }
 0x1ee   :  { %869 = vmatprep.subr.bf16.mxu1 %v868_v26  ;;  %862 = vmatmul.mubr.msk.f32.vlgmr.msra.gmra.mrb[4].mxu0 %vm679_vm9, %v672_v25 }
 0x1ef   :  { %871 = vmatpush1.bf16.msra.mxu1 %v870_v29 }
 0x1f2   :  { %863 = vmatmul.mubr.msk.f32.vlgmr.msra.gmra.mrb[4].mxu1 %vm679_vm9, %v672_v25 }
 0x2c1   :  { %v749_v27 = vpop.f32.mrb[4].mxu0 }
 0x2c2   :  { %v750_v63 = vadd.f32 %v749_v27, %v677_v11  ;;  %v751_v34 = vpop.f32.mrb[5].mxu0 }
 0x2c3   :  { %v752_v13 = vadd.f32 %v751_v34, %v677_v11 }
 0x2c4   :  { %v825_v60 = vmax.f32 %v750_v63, 0.0 }
 0x2c5   :  { %v820_v28 = vpop.f32.mrb[4].mxu1  ;;  %v826_v31 = vmax.f32 %v752_v13, 0.0 }
 0x2c6   :  { %v821_v43 = vadd.f32 %v820_v28, %v677_v11  ;;  %v822_v7 = vpop.f32.mrb[5].mxu1  ;;  %v829_v0 = vmin.f32 %v825_v60, 6.0 }
 0x2c7   :  { %v823_v44 = vadd.f32 %v822_v7, %v677_v11  ;;  %v830_v33 = vmin.f32 %v826_v31, 6.0 }
 0x2c8   :  { %v827_v35 = vmax.f32 %v821_v43, 0.0  ;;  %v833_v8 = vadd.f32 %v888_v14, %v829_v0 }
 0x2c9   :  { %v828_v51 = vmax.f32 %v823_v44, 0.0  ;;  %v834_v39 = vadd.f32 %v889_v36, %v830_v33 }
 0x2ca   :  { %v831_v21 = vmin.f32 %v827_v35, 6.0  ;;  %837 = vst [vmem:[#allocation5] sm:$0xff] %v833_v8 }
 0x2cb   :  { %v832_v61 = vmin.f32 %v828_v51, 6.0  ;;  %838 = vst [vmem:[#allocation5 + $0x8] sm:$0xff] %v834_v39 }
 0x2cc   :  { %v835_v10 = vadd.f32 %v890_v57, %v831_v21 }
 0x2cd   :  { %v836_v58 = vadd.f32 %v891_v46, %v832_v61 }
 0x2ce   :  { %839 = vst [vmem:[#allocation5 + $0x10] sm:$0xff] %v835_v10 }
 0x2cf   :  { %840 = vst [vmem:[#allocation5 + $0x18] sm:$0xff] %v836_v58 }
 0x2d0   :  { %925 = shalt.err (!%p922_p12)
}
 0x2d1   :  { %s926_s26 = scalar_lea.hbm %s1548_s6, 512 }
 0x2d2   :  { %p927_p13 = scmp.ne.s32.totalorder %s1548_s6, %s926_s26  ;;  %p930_p0 = scmp.lt.u32.totalorder %s926_s26, %s1548_s6 }
 0x2d4   :  { %p932_p1 = pnand %p930_p0, %p927_p13 }
 0x2d6   :  { %935 = shalt.err (!%p932_p1)
}
 0x2d7   :  { %850 = dma.vmem_to_hbm [thread:$0]  %s848_s18, 512, %s1548_s6, [#allocation4]  }
 0x2d8   :  { %938 = dma.done.wait [#allocation4], 512  }
 0x2d9   :  { %939 = vsyncadd [#allocation4], 4294966784 }
 0x2da   :  { %854 = vsyncpa [#allocation3], 1 }
 0x2db   :  { %855 = vsyncpa [#allocation4], 1 }

</bundles_post_ra>
